<compile_context>
chip_gen: v7x
topology: tpu7x:2x2x1
jax: 0.10.0
libtpu: 0.0.40
codegen_flags: <defaults>
</compile_context>

<pallas_src>
import functools

import jax
import jax.numpy as jnp
from jax.experimental import pallas as pl
from jax.experimental.pallas import tpu as pltpu


def _round_up(n, m):
    return ((n + m - 1) // m) * m


def mlp_kernel(x_ref, w1_ref, b1_ref, w2_ref, b2_ref, o_ref):
    cdt = w1_ref.dtype
    # f32 operands: force highest precision (bf16x6 passes) for strict parity.
    # bf16 operands: default single-pass MXU.
    prec = (jax.lax.Precision.HIGHEST if cdt == jnp.float32
            else jax.lax.Precision.DEFAULT)
    # fc1: (TB, D) @ (D, Hp) -> f32 accumulator.  x cast to MXU dtype in-kernel
    # so HBM only ever sees the original activation bytes once.
    h = jnp.dot(x_ref[...].astype(cdt), w1_ref[...],
                preferred_element_type=jnp.float32, precision=prec)
    # bias + ReLU in f32 on the accumulator (VPU).
    h = jnp.maximum(h + b1_ref[...], 0.0)
    # fc2: (TB, Hp) @ (Hp, O) -> f32 accumulator; O unpadded (narrow matmul).
    y = jnp.dot(h.astype(cdt), w2_ref[...],
                preferred_element_type=jnp.float32, precision=prec)
    o_ref[...] = (y + b2_ref[...]).astype(o_ref.dtype)


def prepare_mlp_params(w1, b1, w2, b2, *, compute_dtype=jnp.bfloat16):
    """One-time parameter prep (pad hidden dim to 128 lanes, cast MXU operands).

    Hoisted out of the forward path so inference loops don't re-pad constants.
    Padding is exact: padded hidden units have zero weight + zero bias, so
    ReLU(0) = 0 contributes nothing to fc2.
    """
    D, H = w1.shape
    O = w2.shape[1]
    H_pad = _round_up(H, 128)
    w1p = jnp.zeros((D, H_pad), jnp.float32).at[:, :H].set(w1).astype(compute_dtype)
    b1p = jnp.zeros((1, H_pad), jnp.float32).at[0, :H].set(b1)
    w2p = jnp.zeros((H_pad, O), jnp.float32).at[:H, :].set(w2).astype(compute_dtype)
    b2p = jnp.asarray(b2, jnp.float32).reshape(1, O)
    return (w1p, b1p, w2p, b2p)


def mlp_regressor(x, params, *, block_b=1024, jnp_fallback_rows=0):
    """x:(B,D) f32 (or bf16), params from prepare_mlp_params -> (B,O) f32."""
    w1p, b1p, w2p, b2p = params
    B, D = x.shape
    H_pad = w1p.shape[1]
    O = w2p.shape[1]

    # Optional tiny-batch early-out: fixed pallas_call overhead dominates for
    # few-row problems.  Off by default so this script exercises the kernel.
    if B <= jnp_fallback_rows:
        h = jnp.maximum(x.astype(jnp.float32) @ w1p.astype(jnp.float32) + b1p, 0.0)
        return h @ w2p.astype(jnp.float32) + b2p

    # Batch tile: multiple of 8 sublanes; for non-tiny batches guarantee >= 2
    # grid steps so v7x megacore shards the "parallel" axis across both TCs.
    B8 = _round_up(B, 8)
    if B8 <= 16:
        TB = B8
    else:
        TB = min(block_b, _round_up(pl.cdiv(B8, 2), 8))
    grid = (pl.cdiv(B, TB),)

    # Scoped-VMEM budget from the actual tiles (double-buffered inputs/outputs
    # + f32 fc1 activation), with generous headroom.
    op_bytes = jnp.dtype(w1p.dtype).itemsize
    x_bytes = jnp.dtype(x.dtype).itemsize
    budget = (2 * TB * D * x_bytes
              + 2 * TB * O * 4
              + 2 * (D * H_pad + H_pad * O) * op_bytes
              + 2 * (H_pad + O) * 4
              + TB * H_pad * 4)
    vmem_limit = int(min(max(4 * budget, 8 * 1024 * 1024), 64 * 1024 * 1024))

    out = pl.pallas_call(
        mlp_kernel,
        out_shape=jax.ShapeDtypeStruct((B, O), jnp.float32),
        grid=grid,
        in_specs=[
            # Activations: tiled on batch, read unpadded (boundary block masked).
            pl.BlockSpec((TB, D), lambda i: (i, 0)),
            # Weights / biases: constant (0,0) blocks, VMEM-resident across steps.
            pl.BlockSpec((D, H_pad), lambda i: (0, 0)),
            pl.BlockSpec((1, H_pad), lambda i: (0, 0)),
            pl.BlockSpec((H_pad, O), lambda i: (0, 0)),
            pl.BlockSpec((1, O), lambda i: (0, 0)),
        ],
        # Unpadded output: block last dim == full array dim -> legal narrow store,
        # 128x fewer writeback bytes than a lane-padded O for O=1.
        out_specs=pl.BlockSpec((TB, O), lambda i: (i, 0)),
        compiler_params=pltpu.CompilerParams(
            dimension_semantics=("parallel",),   # batch rows are independent
            vmem_limit_bytes=vmem_limit,
        ),
    )(x, w1p, b1p, w2p, b2p)

    return out


def reference(x, w1, b1, w2, b2):
    h = jnp.maximum(x @ w1 + b1, 0.0)
    return h @ w2 + b2


if __name__ == "__main__":
    key = jax.random.PRNGKey(0)
    B, input_dim, hidden_dim, output_dim = 8, 64, 32, 1

    k_x, k_w1, k_b1, k_w2, k_b2, k_big = jax.random.split(key, 6)

    # Deterministic init mimicking PyTorch Linear uniform(-1/sqrt(fan_in), 1/sqrt(fan_in)).
    lim1 = 1.0 / jnp.sqrt(jnp.float32(input_dim))
    lim2 = 1.0 / jnp.sqrt(jnp.float32(hidden_dim))
    w1 = jax.random.uniform(k_w1, (input_dim, hidden_dim), jnp.float32, -lim1, lim1)
    b1 = jax.random.uniform(k_b1, (hidden_dim,), jnp.float32, -lim1, lim1)
    w2 = jax.random.uniform(k_w2, (hidden_dim, output_dim), jnp.float32, -lim2, lim2)
    b2 = jax.random.uniform(k_b2, (output_dim,), jnp.float32, -lim2, lim2)

    x = jax.random.normal(k_x, (B, input_dim), jnp.float32)

    # Default path: bf16 MXU operands, f32 accumulation (params prepared once).
    params_bf16 = prepare_mlp_params(w1, b1, w2, b2, compute_dtype=jnp.bfloat16)
    out = jax.block_until_ready(mlp_regressor(x, params_bf16))
    ref = reference(x, w1, b1, w2, b2)
    assert out.shape == (B, output_dim)
    assert jnp.allclose(out, ref, atol=2e-2, rtol=2e-2)

    # Strict f32 path (HIGHEST-precision dots) for tight parity with the module.
    params_f32 = prepare_mlp_params(w1, b1, w2, b2, compute_dtype=jnp.float32)
    out_f32 = jax.block_until_ready(mlp_regressor(x, params_f32))
    assert jnp.allclose(out_f32, ref, atol=1e-5, rtol=1e-5)

    # Larger batch that is NOT a multiple of the tile: exercises the >=2-step
    # grid and the masked partial boundary block (no wrapper-side padding).
    Bb = 300
    xb = jax.random.normal(k_big, (Bb, input_dim), jnp.float32)
    outb = jax.block_until_ready(mlp_regressor(xb, params_bf16))
    refb = reference(xb, w1, b1, w2, b2)
    assert outb.shape == (Bb, output_dim)
    assert jnp.allclose(outb, refb, atol=2e-2, rtol=2e-2)

    print("KERNEL_OK")
</pallas_src>

<mosaic_0001>
module attributes {stable_mosaic.version = 11 : i64} {
  func.func @mlp_kernel(%arg0: i32, %arg1: memref<8x64xf32, #tpu.memory_space<vmem>>, %arg2: memref<64x128xbf16, #tpu.memory_space<vmem>>, %arg3: memref<1x128xf32, #tpu.memory_space<vmem>>, %arg4: memref<128x1xbf16, #tpu.memory_space<vmem>>, %arg5: memref<1x1xf32, #tpu.memory_space<vmem>>, %arg6: memref<8x1xf32, #tpu.memory_space<vmem>>) attributes {dimension_semantics = [#tpu.dimension_semantics<parallel>], iteration_bounds = array<i64: 1>, scalar_prefetch = 0 : i64, scratch_operands = 0 : i64, tpu.core_type = #tpu.core_type<tc>, window_params = [{transform_indices = @transform_0, window_bounds = array<i64: 8, 64>}, {pipeline_mode = #tpu.pipeline_mode<synchronous>, transform_indices = @transform_1, window_bounds = array<i64: 64, 128>}, {pipeline_mode = #tpu.pipeline_mode<synchronous>, transform_indices = @transform_2, window_bounds = array<i64: 1, 128>}, {pipeline_mode = #tpu.pipeline_mode<synchronous>, transform_indices = @transform_3, window_bounds = array<i64: 128, 1>}, {pipeline_mode = #tpu.pipeline_mode<synchronous>, transform_indices = @transform_4, window_bounds = array<i64: 1, 1>}, {transform_indices = @transform_5, window_bounds = array<i64: 8, 1>}]} {
    %c0 = arith.constant 0 : index
    %c0_0 = arith.constant 0 : index
    %0 = vector.load %arg1[%c0, %c0_0] : memref<8x64xf32, #tpu.memory_space<vmem>>, vector<8x64xf32>
    %1 = arith.truncf %0 : vector<8x64xf32> to vector<8x64xbf16>
    %c0_1 = arith.constant 0 : index
    %c0_2 = arith.constant 0 : index
    %2 = vector.load %arg2[%c0_1, %c0_2] : memref<64x128xbf16, #tpu.memory_space<vmem>>, vector<64x128xbf16>
    %cst = arith.constant dense<0.000000e+00> : vector<8x128xf32>
    %3 = tpu.matmul %1, %2, %cst {dimension_numbers = #tpu.dot_dimension_numbers<[1], [0], [0], [1], [0, 0, 1, 1], [], []>} : vector<8x64xbf16>, vector<64x128xbf16>, vector<8x128xf32> -> vector<8x128xf32>
    %c0_3 = arith.constant 0 : index
    %c0_4 = arith.constant 0 : index
    %4 = vector.load %arg3[%c0_3, %c0_4] : memref<1x128xf32, #tpu.memory_space<vmem>>, vector<1x128xf32>
    %5 = vector.broadcast %4 : vector<1x128xf32> to vector<8x128xf32>
    %6 = arith.addf %3, %5 : vector<8x128xf32>
    %cst_5 = arith.constant 0.000000e+00 : f32
    %7 = vector.broadcast %cst_5 : f32 to vector<8x128xf32>
    %8 = arith.maximumf %6, %7 : vector<8x128xf32>
    %9 = arith.truncf %8 : vector<8x128xf32> to vector<8x128xbf16>
    %c0_6 = arith.constant 0 : index
    %c0_7 = arith.constant 0 : index
    %10 = vector.load %arg4[%c0_6, %c0_7] : memref<128x1xbf16, #tpu.memory_space<vmem>>, vector<128x1xbf16>
    %cst_8 = arith.constant dense<0.000000e+00> : vector<8x1xf32>
    %11 = tpu.matmul %9, %10, %cst_8 {dimension_numbers = #tpu.dot_dimension_numbers<[1], [0], [0], [1], [0, 0, 1, 1], [], []>} : vector<8x128xbf16>, vector<128x1xbf16>, vector<8x1xf32> -> vector<8x1xf32>
    %c0_9 = arith.constant 0 : index
    %c0_10 = arith.constant 0 : index
    %12 = vector.load %arg5[%c0_9, %c0_10] : memref<1x1xf32, #tpu.memory_space<vmem>>, vector<1x1xf32>
    %13 = vector.broadcast %12 : vector<1x1xf32> to vector<8x1xf32>
    %14 = arith.addf %11, %13 : vector<8x1xf32>
    %c0_11 = arith.constant 0 : index
    %c0_12 = arith.constant 0 : index
    %15 = vector.load %arg6[%c0_11, %c0_12] : memref<8x1xf32, #tpu.memory_space<vmem>>, vector<8x1xf32>
    tpu.vector_store %arg6[%c0_11, %c0_12], %14 {strides = array<i32>} : memref<8x1xf32, #tpu.memory_space<vmem>>, vector<8x1xf32>,
    return
  }
  func.func @transform_0(%arg0: i32) -> (i32, i32) {
    %c0_i32 = arith.constant 0 : i32
    %c0_i32_0 = arith.constant 0 : i32
    return %arg0, %c0_i32 : i32, i32
  }
  func.func @transform_1(%arg0: i32) -> (i32, i32) {
    %c0_i32 = arith.constant 0 : i32
    %c0_i32_0 = arith.constant 0 : i32
    %c0_i32_1 = arith.constant 0 : i32
    return %c0_i32, %c0_i32_0 : i32, i32
  }
  func.func @transform_2(%arg0: i32) -> (i32, i32) {
    %c0_i32 = arith.constant 0 : i32
    %c0_i32_0 = arith.constant 0 : i32
    %c0_i32_1 = arith.constant 0 : i32
    return %c0_i32, %c0_i32_0 : i32, i32
  }
  func.func @transform_3(%arg0: i32) -> (i32, i32) {
    %c0_i32 = arith.constant 0 : i32
    %c0_i32_0 = arith.constant 0 : i32
    %c0_i32_1 = arith.constant 0 : i32
    return %c0_i32, %c0_i32_0 : i32, i32
  }
  func.func @transform_4(%arg0: i32) -> (i32, i32) {
    %c0_i32 = arith.constant 0 : i32
    %c0_i32_0 = arith.constant 0 : i32
    %c0_i32_1 = arith.constant 0 : i32
    return %c0_i32, %c0_i32_0 : i32, i32
  }
  func.func @transform_5(%arg0: i32) -> (i32, i32) {
    %c0_i32 = arith.constant 0 : i32
    %c0_i32_0 = arith.constant 0 : i32
    return %arg0, %c0_i32 : i32, i32
  }
}

</mosaic_0001>

<bundles_post_ra>
// kernel: tpu_custom_call.1
= control target key start
LH: loop header
LB: loop body
LE: loop exit
PB: predicated region body
PF: predicated region fallthrough
CT: control target
= control target key end

     0   :  { %v302_v0 = vmov 0.0   ;;  %vm303_vm0 = vmmov 0   ;;  %vm64_vm1 = vcmask 523264   ;;  %vm221_vm2 = vcmask 7168   ;;  %s382_s1 = inlined_call_operand.vmem [shape: bf16[64,128], index: 1, kind: input, shape index: {}]   ;;  %s383_s3 = inlined_call_operand.vmem [shape: bf16[128,1], index: 3, kind: input, shape index: {}]   ;;  %s384_s0 = inlined_call_operand.vmem [shape: f32[8,64], index: 0, kind: input, shape index: {}]   ;;  %s385_s4 = inlined_call_operand.<no memory space> [shape: f32[1,1], index: 4, kind: input, shape index: {}]   ;;  %s386_s2 = inlined_call_operand.vmem [shape: f32[1,128], index: 2, kind: input, shape index: {}]   ;;  %s387_s5 = inlined_call_operand.vmem [shape: f32[8,1], index: 5, kind: output, shape index: {}]  }
   0x1   :  { %256 = vmatprep.subr.bf16.mxu0 %v302_v0  ;;  %v290_v1 = vld [vmem:[%s382_s1] sm:$0xff]   ;;  %264 = vmatprep.mubr.msk.bf16.mxu0 %vm303_vm0, %v302_v0  ;;  %v291_v2 = vld [vmem:[%s382_s1 + $0x8] sm:$0xff]   ;;  %v292_v4 = vld [vmem:[%s382_s1 + $0x10] sm:$0xff]   ;;  %v10_v15 = vstv %s385_s4 }
   0x2   :  { %268 = vmatprep.subr.bf16.mxu1 %v302_v0  ;;  %284 = vmatprep.mubr.msk.bf16.mxu1 %vm303_vm0, %v302_v0  ;;  %v294_v3 = vld [vmem:[%s383_s3] sm:$0xff]   ;;  %v295_v5 = vld [vmem:[%s383_s3 + $0x8] sm:$0xff]   ;;  %v293_v6 = vld [vmem:[%s382_s1 + $0x18] sm:$0xff]   ;;  %11 = vst [vmem:[#allocation2] sm:$0x1] %v10_v15 }
   0x3   :  { %257 = vmatpush3.bf16.msra.mxu0 %v290_v1  ;;  %269 = vmatpush3.bf16.msra.mxu1 %v294_v3  ;;  %v23_v7 = vld [vmem:[%s384_s0] sm:$0xff]  ;;  %v296_v8 = vld [vmem:[%s383_s3 + $0x10] sm:$0xff]   ;;  %v297_v10 = vld [vmem:[%s383_s3 + $0x18] sm:$0xff]  }
   0x4   :  { %258 = vmatprep.subr.bf16.mxu0 %v302_v0  ;;  %270 = vmatprep.subr.bf16.mxu1 %v302_v0  ;;  %v24_v9 = vpack.c.bf16 %v23_v7, %v23_v7  ;;  %v298_v11 = vld [vmem:[%s383_s3 + $0x20] sm:$0xff]   ;;  %v299_v12 = vld [vmem:[%s383_s3 + $0x28] sm:$0xff]   ;;  %v300_v13 = vld [vmem:[%s383_s3 + $0x30] sm:$0xff]  }
   0x5   :  { %v301_v14 = vld [vmem:[%s383_s3 + $0x38] sm:$0xff]   ;;  %v227_v16 = vld [vmem:[%s386_s2] ss:$0 sm:$0xff] }
   0x7   :  { %259 = vmatpush3.bf16.msra.mxu0 %v291_v2  ;;  %271 = vmatpush3.bf16.msra.mxu1 %v295_v5 }
   0x8   :  { %260 = vmatprep.subr.bf16.mxu0 %v302_v0  ;;  %272 = vmatprep.subr.bf16.mxu1 %v302_v0 }
   0x9   :  { %v233_v24 = vld [vmem:[#allocation2] ss:$0 sm:$0xff] }
   0xb   :  { %261 = vmatpush3.bf16.msra.mxu0 %v292_v4  ;;  %273 = vmatpush3.bf16.msra.mxu1 %v296_v8 }
   0xc   :  { %262 = vmatprep.subr.bf16.mxu0 %v302_v0  ;;  %274 = vmatprep.subr.bf16.mxu1 %v302_v0 }
   0xf   :  { %263 = vmatpush3.bf16.msra.mxu0 %v293_v6  ;;  %275 = vmatpush3.bf16.msra.mxu1 %v297_v10 }
  0x10   :  { %276 = vmatprep.subr.bf16.mxu1 %v302_v0 }
  0x12   :  { %265 = vmatmul.mubr.msk.bf16.vlgmr.msra.gmra.mrb[0].mxu0 %vm64_vm1, %v24_v9 }
  0x13   :  { %277 = vmatpush3.bf16.msra.mxu1 %v298_v11 }
  0x14   :  { %278 = vmatprep.subr.bf16.mxu1 %v302_v0 }
  0x17   :  { %279 = vmatpush3.bf16.msra.mxu1 %v299_v12 }
  0x18   :  { %280 = vmatprep.subr.bf16.mxu1 %v302_v0 }
  0x1b   :  { %281 = vmatpush3.bf16.msra.mxu1 %v300_v13 }
  0x1c   :  { %282 = vmatprep.subr.bf16.mxu1 %v302_v0 }
  0x1f   :  { %283 = vmatpush3.bf16.msra.mxu1 %v301_v14 }
  0xe5   :  { %v102_v17 = vpop.f32.mrb[0].mxu0 }
  0xe6   :  { %v103_v18 = vadd.f32 %v227_v16, %v102_v17  ;;  %v266_v19 = vpop.f32.mrb[1].mxu0 }
  0xe7   :  { %v105_v20 = vpop.f32.mrb[2].mxu0 }
  0xe8   :  { %v108_v21 = vmax.f32 %v103_v18, 0.0  ;;  %v267_v22 = vpop.f32.mrb[3].mxu0 }
  0xea   :  { %v109_v23 = vpack.c.bf16 %v108_v21, %v108_v21 }
  0xec   :  { %285 = vmatmul.mubr.bf16.vlgmr.msra.gmra.mrb[0].mxu1 %v109_v23 }
 0x1bf   :  { %v215_v25 = vpop.f32.mrb[0].mxu1 }
 0x1c0   :  { %v216_v26 = vadd.f32 %v233_v24, %v215_v25  ;;  %v286_v27 = vpop.f32.mrb[1].mxu1 }
 0x1c1   :  { %v218_v28 = vpop.f32.mrb[2].mxu1 }
 0x1c2   :  { %222 = vst.msk [vmem:[%s387_s5] sm:$0xff] %vm221_vm2, %v216_v26  ;;  %v287_v29 = vpop.f32.mrb[3].mxu1 }

</bundles_post_ra>
